<compile_context>
chip_gen: v7x
topology: tpu7x:2x2x1
jax: 0.10.0
libtpu: 0.0.40
codegen_flags: <defaults>
</compile_context>

<pallas_src>
import functools
import math

import jax
import jax.numpy as jnp
from jax.experimental import pallas as pl
from jax.experimental.pallas import tpu as pltpu


# ----------------------------------------------------------------------------
# Elementwise helpers (numerically stable; only exp/log/div/where -> safe to
# lower in Mosaic).  Shared with the pure-JAX reference so numerics match.
# ----------------------------------------------------------------------------
def _sigmoid(x):
    # Stable: never exponentiates a positive number (review correctness note).
    z = jnp.exp(-jnp.abs(x))
    return jnp.where(x >= 0, 1.0 / (1.0 + z), z / (1.0 + z))


def _softplus(x):
    # Matches torch.nn.functional.softplus(beta=1, threshold=20).
    safe = jnp.minimum(x, 20.0)
    return jnp.where(x > 20.0, x, jnp.log(1.0 + jnp.exp(safe)))


# ----------------------------------------------------------------------------
# Kernel A: fused projections + depthwise causal conv + SiLU + dt_proj/softplus.
# One grid step = one batch element (sequence kept whole at these small sizes).
# ----------------------------------------------------------------------------
def _mamba_proj_kernel(x_ref, w_in_ref, w_conv_ref, b_conv_ref,
                       w_xproj_ref, w_dt_ref, b_dt_ref,
                       u_ref, dt_ref, b_out_ref, c_out_ref, res_ref,
                       *, d_conv: int, d_inner: int, dt_rank: int,
                       d_state: int, remove_conv: bool):
    cdt = w_in_ref.dtype                         # GEMM/storage (compute) dtype
    x = x_ref[0]                                 # (l, d_model), compute dtype
    seq_len = x.shape[0]

    # Fused in_proj (x-branch and gate branch in ONE MXU pass), f32 accumulate.
    xz = jnp.dot(x, w_in_ref[...], preferred_element_type=jnp.float32)
    xp = xz[:, :d_inner]                         # (l, d_inner) f32
    res = xz[:, d_inner:]                        # (l, d_inner) f32

    if not remove_conv:
        # Depthwise causal conv1d + SiLU.  x[t-j] comes from a sublane roll
        # (XLU slot) with the first j wrapped rows masked to zero -- no
        # zero-concat and no per-tap crossing-tile slice copies.
        w_conv = w_conv_ref[...].astype(jnp.float32)       # (d_conv, d_inner)
        row = jax.lax.broadcasted_iota(jnp.int32, (seq_len, d_inner), 0)
        conv = b_conv_ref[...].astype(jnp.float32)          # (1, d_inner)
        for j in range(d_conv):                              # out[t] += w[K-1-j]*x[t-j]
            if j == 0:
                shifted = xp
            else:
                shifted = jnp.where(row >= j,
                                    pltpu.roll(xp, shift=j, axis=0), 0.0)
            conv = conv + shifted * w_conv[d_conv - 1 - j:d_conv - j, :]
        xp = conv * _sigmoid(conv)                           # SiLU, f32

    # Fused x_proj (delta/B/C in ONE MXU pass), split with static lane slices.
    xdbl = jnp.dot(xp.astype(cdt), w_xproj_ref[...],
                   preferred_element_type=jnp.float32)       # (l, dt_rank+2*d_state)
    dtr = xdbl[:, :dt_rank]
    bmat = xdbl[:, dt_rank:dt_rank + d_state]
    cmat = xdbl[:, dt_rank + d_state:]

    dt_lin = (jnp.dot(dtr.astype(cdt), w_dt_ref[...],
                      preferred_element_type=jnp.float32)
              + b_dt_ref[...].astype(jnp.float32))
    delta = _softplus(dt_lin)                                # (l, d_inner), f32

    u_ref[0] = xp.astype(u_ref.dtype)
    dt_ref[0] = delta.astype(dt_ref.dtype)                   # delta stays f32
    b_out_ref[0] = bmat.astype(b_out_ref.dtype)
    c_out_ref[0] = cmat.astype(c_out_ref.dtype)
    res_ref[0] = res.astype(res_ref.dtype)


# ----------------------------------------------------------------------------
# Kernel B: chunked selective scan + gating/skip + out_proj + RMSNorm.
# Grid = time chunks (sequential).  SSM state (b, d_state, d_inner) lives in a
# VMEM scratch carried across chunks; the recurrence is vectorized over
# d_state (d_state on sublanes, d_inner on lanes).
# ----------------------------------------------------------------------------
def _mamba_scan_norm_kernel(dt_ref, u_ref, b_ref, c_ref, res_ref,
                            a_neg_ref, d_ref, w_out_ref, w_norm_ref,
                            o_ref, s_ref, y_ref,
                            *, t_chunk: int, skip: str,
                            skip_strength: float, eps: float):
    c_idx = pl.program_id(0)

    # NOTE: the time-chunk axis is a true recurrence -- it MUST remain
    # "arbitrary" (sequential).  Marking it "parallel" silently breaks the
    # state carry (review correctness note).
    @pl.when(c_idx == 0)
    def _init():
        s_ref[...] = jnp.zeros_like(s_ref)

    cdt = w_out_ref.dtype
    batch = dt_ref.shape[0]

    dt3 = dt_ref[...].astype(jnp.float32)        # (b, tc, d_inner)
    u3 = u_ref[...].astype(jnp.float32)          # (b, tc, d_inner)
    res3 = res_ref[...].astype(jnp.float32)      # (b, tc, d_inner)
    bm3 = b_ref[...].astype(jnp.float32)         # (b, tc, d_state)
    cm3 = c_ref[...].astype(jnp.float32)         # (b, tc, d_state)

    # Once per chunk: put d_state on sublanes so per-timestep B/C columns are
    # cheap static lane slices (replaces the old per-step one-hot XLU reduce).
    bT = jnp.stack([bm3[bi].T for bi in range(batch)], axis=0)  # (b, d_state, tc)
    cT = jnp.stack([cm3[bi].T for bi in range(batch)], axis=0)  # (b, d_state, tc)

    a_neg = a_neg_ref[...].astype(jnp.float32)   # (d_state, d_inner) = -exp(A_log)^T

    s = s_ref[...]                               # (b, d_state, d_inner) f32 carry
    for t in range(t_chunk):                     # static unroll over the chunk
        dt_t = dt3[:, t:t + 1, :]                # (b, 1, d_inner)
        g_t = dt_t * u3[:, t:t + 1, :]           # delta * u
        b_t = bT[:, :, t:t + 1]                  # (b, d_state, 1)
        c_t = cT[:, :, t:t + 1]                  # (b, d_state, 1)
        dA = jnp.exp(dt_t * a_neg[None, :, :])   # (b, d_state, d_inner)
        s = dA * s + b_t * g_t
        y_ref[:, t, :] = jnp.sum(c_t * s, axis=1)           # (b, d_inner)
    s_ref[...] = s                               # carry state to next chunk

    y = y_ref[...] + u3 * d_ref[...][None, :, :]             # + D * u
    if skip == "Gating":
        y = y * (res3 * _sigmoid(res3))
    elif skip == "Additive":
        y = y + skip_strength * u3
    elif skip != "No Skip":
        raise ValueError("unsupported skip mode: %s" % skip)

    # ONE out_proj GEMM per chunk on a (b*t_chunk, d_inner) slab, then fused
    # RMSNorm over d_model.
    y2 = y.reshape(batch * t_chunk, -1).astype(cdt)
    out = jnp.dot(y2, w_out_ref[...], preferred_element_type=jnp.float32)
    ms = jnp.mean(out * out, axis=-1, keepdims=True)
    out = out * jax.lax.rsqrt(ms + eps) * w_norm_ref[...].astype(jnp.float32)

    o_ref[...] = out.reshape(batch, t_chunk, -1).astype(o_ref.dtype)


# ----------------------------------------------------------------------------
# Wrapper: weight-layout plumbing + the two pallas_calls (no activation
# transposes between kernels; Kernel B reads Kernel A's outputs batch-major).
# ----------------------------------------------------------------------------
def _pick_chunk(l):
    for c in (128, 64, 32, 16):
        if l % c == 0:
            return c
    return l


def residual_block_no_skip(x, params, *, skip="Gating", remove_conv=False,
                           skip_strength=1.0, eps=1e-5,
                           compute_dtype=jnp.float32, t_chunk=None):
    """ResidualBlockNoSkip.forward(x) = RMSNorm(MambaBlock(x)).

    x: (b, l, d_model) float32.  `params` uses PyTorch weight layouts.
    `compute_dtype` = dtype of weights / GEMM inputs / u,res,B,C intermediates
    (delta, SSM state and norm statistics always stay f32).
    """
    b, l, d_model = x.shape
    d_inner, d_state = params["A_log"].shape
    d_conv = params["conv_w"].shape[-1]
    dt_rank = params["dt_proj_w"].shape[1]

    if t_chunk is None:
        t_chunk = _pick_chunk(l)
    assert l % t_chunk == 0, "seq length must be a multiple of t_chunk"
    assert t_chunk == l or t_chunk % 16 == 0, "t_chunk must be 16-aligned (or = l)"
    n_chunks = l // t_chunk
    cdt = compute_dtype

    # --- wrapper-side weight plumbing (tiny tensors only; no activation passes)
    w_in = jnp.transpose(params["in_proj_w"]).astype(cdt)         # (d_model, 2*d_inner)
    w_conv = jnp.transpose(params["conv_w"][:, 0, :]).astype(jnp.float32)  # (d_conv, d_inner)
    b_conv = params["conv_b"].reshape(1, d_inner).astype(jnp.float32)
    w_xproj = jnp.transpose(params["x_proj_w"]).astype(cdt)       # (d_inner, dt_rank+2*d_state)
    w_dt = jnp.transpose(params["dt_proj_w"]).astype(cdt)         # (dt_rank, d_inner)
    b_dt = params["dt_proj_b"].reshape(1, d_inner).astype(jnp.float32)
    a_neg = jnp.transpose(-jnp.exp(params["A_log"].astype(jnp.float32)))  # hoisted -exp(A_log)^T
    d_param = params["D"].reshape(1, d_inner).astype(jnp.float32)
    w_out = jnp.transpose(params["out_proj_w"]).astype(cdt)       # (d_inner, d_model)
    w_norm = params["norm_w"].reshape(1, d_model).astype(jnp.float32)

    x_c = x.astype(cdt)
    const2d = lambda i: (0, 0)  # noqa: E731  (VMEM-resident weights)

    # --- Kernel A: batch-parallel projections --------------------------------
    out_shapes_a = (
        jax.ShapeDtypeStruct((b, l, d_inner), cdt),          # u (post conv+SiLU)
        jax.ShapeDtypeStruct((b, l, d_inner), jnp.float32),  # delta (keep f32)
        jax.ShapeDtypeStruct((b, l, d_state), cdt),          # B
        jax.ShapeDtypeStruct((b, l, d_state), cdt),          # C
        jax.ShapeDtypeStruct((b, l, d_inner), cdt),          # res (gate branch)
    )
    u, delta, bmat, cmat, res = pl.pallas_call(
        functools.partial(_mamba_proj_kernel, d_conv=d_conv, d_inner=d_inner,
                          dt_rank=dt_rank, d_state=d_state,
                          remove_conv=remove_conv),
        out_shape=out_shapes_a,
        grid_spec=pltpu.PrefetchScalarGridSpec(
            num_scalar_prefetch=0,
            grid=(b,),
            in_specs=[
                pl.BlockSpec((1, l, d_model), lambda i: (i, 0, 0)),
                pl.BlockSpec((d_model, 2 * d_inner), const2d),
                pl.BlockSpec((d_conv, d_inner), const2d),
                pl.BlockSpec((1, d_inner), const2d),
                pl.BlockSpec((d_inner, dt_rank + 2 * d_state), const2d),
                pl.BlockSpec((dt_rank, d_inner), const2d),
                pl.BlockSpec((1, d_inner), const2d),
            ],
            out_specs=[
                pl.BlockSpec((1, l, d_inner), lambda i: (i, 0, 0)),
                pl.BlockSpec((1, l, d_inner), lambda i: (i, 0, 0)),
                pl.BlockSpec((1, l, d_state), lambda i: (i, 0, 0)),
                pl.BlockSpec((1, l, d_state), lambda i: (i, 0, 0)),
                pl.BlockSpec((1, l, d_inner), lambda i: (i, 0, 0)),
            ],
        ),
        compiler_params=pltpu.CompilerParams(
            dimension_semantics=("parallel",),
            # Re-derive per generation: <=~56 MiB on v7x, can go higher on v5e/v6e.
            vmem_limit_bytes=32 * 1024 * 1024),
    )(x_c, w_in, w_conv, b_conv, w_xproj, w_dt, b_dt)

    # --- Kernel B: sequential chunked scan fused with skip/out_proj/RMSNorm --
    out = pl.pallas_call(
        functools.partial(_mamba_scan_norm_kernel, t_chunk=t_chunk, skip=skip,
                          skip_strength=skip_strength, eps=eps),
        out_shape=jax.ShapeDtypeStruct((b, l, d_model), x.dtype),
        grid_spec=pltpu.PrefetchScalarGridSpec(
            num_scalar_prefetch=0,
            grid=(n_chunks,),
            in_specs=[
                pl.BlockSpec((b, t_chunk, d_inner), lambda c: (0, c, 0)),  # delta
                pl.BlockSpec((b, t_chunk, d_inner), lambda c: (0, c, 0)),  # u
                pl.BlockSpec((b, t_chunk, d_state), lambda c: (0, c, 0)),  # B
                pl.BlockSpec((b, t_chunk, d_state), lambda c: (0, c, 0)),  # C
                pl.BlockSpec((b, t_chunk, d_inner), lambda c: (0, c, 0)),  # res
                pl.BlockSpec((d_state, d_inner), lambda c: (0, 0)),        # -exp(A_log)^T
                pl.BlockSpec((1, d_inner), lambda c: (0, 0)),              # D
                pl.BlockSpec((d_inner, d_model), lambda c: (0, 0)),        # W_out
                pl.BlockSpec((1, d_model), lambda c: (0, 0)),              # norm weight
            ],
            out_specs=pl.BlockSpec((b, t_chunk, d_model), lambda c: (0, c, 0)),
            scratch_shapes=[
                pltpu.VMEM((b, d_state, d_inner), jnp.float32),   # SSM state carry
                pltpu.VMEM((b, t_chunk, d_inner), jnp.float32),   # per-chunk y
            ],
        ),
        compiler_params=pltpu.CompilerParams(
            dimension_semantics=("arbitrary",),   # recurrence: MUST stay sequential
            vmem_limit_bytes=32 * 1024 * 1024),
    )(delta, u, bmat, cmat, res, a_neg, d_param, w_out, w_norm)

    return out


# ----------------------------------------------------------------------------
# Pure-JAX reference mirroring the PyTorch module (for correctness checking).
# ----------------------------------------------------------------------------
def residual_block_ref(x, p, *, skip, remove_conv, skip_strength, eps):
    b, l, _ = x.shape
    d_inner, d_state = p["A_log"].shape
    dt_rank = p["dt_proj_w"].shape[1]
    d_conv = p["conv_w"].shape[-1]
    hp = jax.lax.Precision.HIGHEST

    xz = jnp.einsum("bld,ed->ble", x, p["in_proj_w"], precision=hp)
    xp, res = xz[..., :d_inner], xz[..., d_inner:]
    if not remove_conv:
        w = p["conv_w"][:, 0, :]                              # (d_inner, d_conv)
        xpad = jnp.concatenate(
            [jnp.zeros((b, d_conv - 1, d_inner), x.dtype), xp], axis=1)
        conv = p["conv_b"][None, None, :]
        for k in range(d_conv):
            conv = conv + xpad[:, k:k + l, :] * w[:, k][None, None, :]
        xp = conv * _sigmoid(conv)
    u = xp
    x_dbl = jnp.einsum("bld,ed->ble", u, p["x_proj_w"], precision=hp)
    dtr = x_dbl[..., :dt_rank]
    Bm = x_dbl[..., dt_rank:dt_rank + d_state]
    Cm = x_dbl[..., dt_rank + d_state:]
    delta = _softplus(
        jnp.einsum("blr,er->ble", dtr, p["dt_proj_w"], precision=hp)
        + p["dt_proj_b"][None, None, :])
    A = -jnp.exp(p["A_log"])
    dA = jnp.exp(delta[..., None] * A[None, None, :, :])
    dBu = delta[..., None] * Bm[:, :, None, :] * u[..., None]
    s = jnp.zeros((b, d_inner, d_state), x.dtype)
    ys = []
    for i in range(l):
        s = dA[:, i] * s + dBu[:, i]
        ys.append(jnp.einsum("bdn,bn->bd", s, Cm[:, i], precision=hp))
    y = jnp.stack(ys, axis=1) + u * p["D"][None, None, :]
    if skip == "Gating":
        y = y * (res * _sigmoid(res))
    elif skip == "Additive":
        y = y + skip_strength * u
    out = jnp.einsum("ble,de->bld", y, p["out_proj_w"], precision=hp)
    ms = jnp.mean(out * out, axis=-1, keepdims=True)
    return out * jax.lax.rsqrt(ms + eps) * p["norm_w"][None, None, :]


if __name__ == "__main__":
    batch, seq, d_model = 2, 32, 32
    expand, d_state, d_conv = 2, 16, 4
    d_inner = expand * d_model
    dt_rank = math.ceil(d_model / 16)
    skip, remove_conv, skip_strength, eps = "Gating", False, 1.0, 1e-5
    t_chunk = 16   # 2 chunks -> exercises the cross-chunk state carry

    key = jax.random.PRNGKey(0)
    ks = jax.random.split(key, 8)
    params = {
        "in_proj_w": jax.random.normal(ks[1], (2 * d_inner, d_model),
                                       jnp.float32) / math.sqrt(d_model),
        "conv_w": jax.random.normal(ks[2], (d_inner, 1, d_conv),
                                    jnp.float32) * 0.3,
        "conv_b": jax.random.normal(ks[3], (d_inner,), jnp.float32) * 0.1,
        "x_proj_w": jax.random.normal(ks[4], (dt_rank + 2 * d_state, d_inner),
                                      jnp.float32) / math.sqrt(d_inner),
        "dt_proj_w": jax.random.normal(ks[5], (d_inner, dt_rank),
                                       jnp.float32) / math.sqrt(dt_rank),
        "dt_proj_b": jax.random.normal(ks[6], (d_inner,), jnp.float32) * 0.1,
        "A_log": jnp.log(jnp.tile(
            jnp.arange(1, d_state + 1, dtype=jnp.float32)[None, :],
            (d_inner, 1))),
        "D": jnp.ones((d_inner,), jnp.float32),
        "out_proj_w": jax.random.normal(ks[7], (d_model, d_inner),
                                        jnp.float32) / math.sqrt(d_inner),
        "norm_w": jnp.ones((d_model,), jnp.float32),
    }
    x = jax.random.normal(ks[0], (batch, seq, d_model), jnp.float32)

    ref = residual_block_ref(x, params, skip=skip, remove_conv=remove_conv,
                             skip_strength=skip_strength, eps=eps)

    # f32 path: strict check.
    out_f32 = residual_block_no_skip(
        x, params, skip=skip, remove_conv=remove_conv,
        skip_strength=skip_strength, eps=eps,
        compute_dtype=jnp.float32, t_chunk=t_chunk)
    out_f32 = jax.block_until_ready(out_f32)
    assert out_f32.shape == x.shape
    assert jnp.allclose(out_f32, ref, atol=1e-2, rtol=1e-2), \
        "f32 kernel mismatch vs reference"

    # bf16 path (review item: bf16 weights/GEMM inputs/intermediates, f32
    # accumulation + f32 delta/state/norm stats).  Looser tolerance: the error
    # is bf16 input quantization, not structure (structural bugs are O(1)).
    out_bf16 = residual_block_no_skip(
        x, params, skip=skip, remove_conv=remove_conv,
        skip_strength=skip_strength, eps=eps,
        compute_dtype=jnp.bfloat16, t_chunk=t_chunk)
    out_bf16 = jax.block_until_ready(out_bf16)
    max_err = float(jnp.max(jnp.abs(out_bf16 - ref)))
    mean_err = float(jnp.mean(jnp.abs(out_bf16 - ref)))
    assert max_err < 0.25 and mean_err < 0.03, \
        f"bf16 kernel diverged from reference (max={max_err}, mean={mean_err})"

    print("KERNEL_OK")
</pallas_src>

<mosaic_0001>
module attributes {stable_mosaic.version = 11 : i64} {
  func.func @_mamba_proj_kernel(%arg0: i32, %arg1: memref<1x32x32xf32, #tpu.memory_space<vmem>>, %arg2: memref<32x128xf32, #tpu.memory_space<vmem>>, %arg3: memref<4x64xf32, #tpu.memory_space<vmem>>, %arg4: memref<1x64xf32, #tpu.memory_space<vmem>>, %arg5: memref<64x34xf32, #tpu.memory_space<vmem>>, %arg6: memref<2x64xf32, #tpu.memory_space<vmem>>, %arg7: memref<1x64xf32, #tpu.memory_space<vmem>>, %arg8: memref<1x32x64xf32, #tpu.memory_space<vmem>>, %arg9: memref<1x32x64xf32, #tpu.memory_space<vmem>>, %arg10: memref<1x32x16xf32, #tpu.memory_space<vmem>>, %arg11: memref<1x32x16xf32, #tpu.memory_space<vmem>>, %arg12: memref<1x32x64xf32, #tpu.memory_space<vmem>>) attributes {dimension_semantics = [#tpu.dimension_semantics<parallel>], iteration_bounds = array<i64: 2>, scalar_prefetch = 0 : i64, scratch_operands = 0 : i64, tpu.core_type = #tpu.core_type<tc>, window_params = [{transform_indices = @transform_0, window_bounds = array<i64: 1, 32, 32>}, {pipeline_mode = #tpu.pipeline_mode<synchronous>, transform_indices = @transform_1, window_bounds = array<i64: 32, 128>}, {pipeline_mode = #tpu.pipeline_mode<synchronous>, transform_indices = @transform_2, window_bounds = array<i64: 4, 64>}, {pipeline_mode = #tpu.pipeline_mode<synchronous>, transform_indices = @transform_3, window_bounds = array<i64: 1, 64>}, {pipeline_mode = #tpu.pipeline_mode<synchronous>, transform_indices = @transform_4, window_bounds = array<i64: 64, 34>}, {pipeline_mode = #tpu.pipeline_mode<synchronous>, transform_indices = @transform_5, window_bounds = array<i64: 2, 64>}, {pipeline_mode = #tpu.pipeline_mode<synchronous>, transform_indices = @transform_6, window_bounds = array<i64: 1, 64>}, {transform_indices = @transform_7, window_bounds = array<i64: 1, 32, 64>}, {transform_indices = @transform_8, window_bounds = array<i64: 1, 32, 64>}, {transform_indices = @transform_9, window_bounds = array<i64: 1, 32, 16>}, {transform_indices = @transform_10, window_bounds = array<i64: 1, 32, 16>}, {transform_indices = @transform_11, window_bounds = array<i64: 1, 32, 64>}]} {
    %c0 = arith.constant 0 : index
    %c0_0 = arith.constant 0 : index
    %c0_1 = arith.constant 0 : index
    %0 = vector.load %arg1[%c0, %c0_0, %c0_1] : memref<1x32x32xf32, #tpu.memory_space<vmem>>, vector<1x32x32xf32>
    %1 = vector.shape_cast %0 : vector<1x32x32xf32> to vector<32x32xf32>
    %c0_2 = arith.constant 0 : index
    %c0_3 = arith.constant 0 : index
    %2 = vector.load %arg2[%c0_2, %c0_3] : memref<32x128xf32, #tpu.memory_space<vmem>>, vector<32x128xf32>
    %cst = arith.constant dense<0.000000e+00> : vector<32x128xf32>
    %3 = tpu.matmul %1, %2, %cst {dimension_numbers = #tpu.dot_dimension_numbers<[1], [0], [0], [1], [0, 0, 1, 1], [], []>} : vector<32x32xf32>, vector<32x128xf32>, vector<32x128xf32> -> vector<32x128xf32>
    %4 = vector.extract_strided_slice %3 {offsets = [0, 0], sizes = [32, 64], strides = [1, 1]} : vector<32x128xf32> to vector<32x64xf32>
    %5 = vector.extract_strided_slice %3 {offsets = [0, 64], sizes = [32, 64], strides = [1, 1]} : vector<32x128xf32> to vector<32x64xf32>
    %c0_4 = arith.constant 0 : index
    %c0_5 = arith.constant 0 : index
    %6 = vector.load %arg3[%c0_4, %c0_5] : memref<4x64xf32, #tpu.memory_space<vmem>>, vector<4x64xf32>
    %7 = tpu.iota {dimensions = array<i32: 0>} : vector<32x64xi32>
    %c0_6 = arith.constant 0 : index
    %c0_7 = arith.constant 0 : index
    %8 = vector.load %arg4[%c0_6, %c0_7] : memref<1x64xf32, #tpu.memory_space<vmem>>, vector<1x64xf32>
    %9 = vector.extract_strided_slice %6 {offsets = [3, 0], sizes = [1, 64], strides = [1, 1]} : vector<4x64xf32> to vector<1x64xf32>
    %10 = vector.broadcast %9 : vector<1x64xf32> to vector<32x64xf32>
    %11 = arith.mulf %4, %10 : vector<32x64xf32>
    %12 = vector.broadcast %8 : vector<1x64xf32> to vector<32x64xf32>
    %13 = arith.addf %12, %11 : vector<32x64xf32>
    %c1_i32 = arith.constant 1 : i32
    %14 = vector.broadcast %c1_i32 : i32 to vector<32x64xi32>
    %15 = arith.cmpi sge, %7, %14 : vector<32x64xi32>
    %c1_i32_8 = arith.constant 1 : i32
    %16 = tpu.dynamic_rotate %4 by %c1_i32_8 dim 0 : vector<32x64xf32>, i32 -> vector<32x64xf32>
    %cst_9 = arith.constant 0.000000e+00 : f32
    %17 = vector.broadcast %cst_9 : f32 to vector<32x64xf32>
    %18 = arith.select %15, %16, %17 : vector<32x64xi1>, vector<32x64xf32>
    %19 = vector.extract_strided_slice %6 {offsets = [2, 0], sizes = [1, 64], strides = [1, 1]} : vector<4x64xf32> to vector<1x64xf32>
    %20 = vector.broadcast %19 : vector<1x64xf32> to vector<32x64xf32>
    %21 = arith.mulf %18, %20 : vector<32x64xf32>
    %22 = arith.addf %13, %21 : vector<32x64xf32>
    %c2_i32 = arith.constant 2 : i32
    %23 = vector.broadcast %c2_i32 : i32 to vector<32x64xi32>
    %24 = arith.cmpi sge, %7, %23 : vector<32x64xi32>
    %c2_i32_10 = arith.constant 2 : i32
    %25 = tpu.dynamic_rotate %4 by %c2_i32_10 dim 0 : vector<32x64xf32>, i32 -> vector<32x64xf32>
    %cst_11 = arith.constant 0.000000e+00 : f32
    %26 = vector.broadcast %cst_11 : f32 to vector<32x64xf32>
    %27 = arith.select %24, %25, %26 : vector<32x64xi1>, vector<32x64xf32>
    %28 = vector.extract_strided_slice %6 {offsets = [1, 0], sizes = [1, 64], strides = [1, 1]} : vector<4x64xf32> to vector<1x64xf32>
    %29 = vector.broadcast %28 : vector<1x64xf32> to vector<32x64xf32>
    %30 = arith.mulf %27, %29 : vector<32x64xf32>
    %31 = arith.addf %22, %30 : vector<32x64xf32>
    %c3_i32 = arith.constant 3 : i32
    %32 = vector.broadcast %c3_i32 : i32 to vector<32x64xi32>
    %33 = arith.cmpi sge, %7, %32 : vector<32x64xi32>
    %c3_i32_12 = arith.constant 3 : i32
    %34 = tpu.dynamic_rotate %4 by %c3_i32_12 dim 0 : vector<32x64xf32>, i32 -> vector<32x64xf32>
    %cst_13 = arith.constant 0.000000e+00 : f32
    %35 = vector.broadcast %cst_13 : f32 to vector<32x64xf32>
    %36 = arith.select %33, %34, %35 : vector<32x64xi1>, vector<32x64xf32>
    %37 = vector.extract_strided_slice %6 {offsets = [0, 0], sizes = [1, 64], strides = [1, 1]} : vector<4x64xf32> to vector<1x64xf32>
    %38 = vector.broadcast %37 : vector<1x64xf32> to vector<32x64xf32>
    %39 = arith.mulf %36, %38 : vector<32x64xf32>
    %40 = arith.addf %31, %39 : vector<32x64xf32>
    %41 = math.absf %40 : vector<32x64xf32>
    %cst_14 = arith.constant 0.000000e+00 : f32
    %42 = vector.broadcast %cst_14 : f32 to vector<32x64xf32>
    %43 = arith.subf %42, %41 : vector<32x64xf32>
    %44 = math.exp %43 : vector<32x64xf32>
    %cst_15 = arith.constant 0.000000e+00 : f32
    %45 = vector.broadcast %cst_15 : f32 to vector<32x64xf32>
    %46 = arith.cmpf oge, %40, %45 : vector<32x64xf32>
    %cst_16 = arith.constant 1.000000e+00 : f32
    %47 = vector.broadcast %cst_16 : f32 to vector<32x64xf32>
    %48 = arith.addf %47, %44 : vector<32x64xf32>
    %cst_17 = arith.constant 1.000000e+00 : f32
    %49 = vector.broadcast %cst_17 : f32 to vector<32x64xf32>
    %50 = arith.divf %49, %48 : vector<32x64xf32>
    %cst_18 = arith.constant 1.000000e+00 : f32
    %51 = vector.broadcast %cst_18 : f32 to vector<32x64xf32>
    %52 = arith.addf %51, %44 : vector<32x64xf32>
    %53 = arith.divf %44, %52 : vector<32x64xf32>
    %54 = arith.select %46, %50, %53 : vector<32x64xi1>, vector<32x64xf32>
    %55 = arith.mulf %40, %54 : vector<32x64xf32>
    %c0_19 = arith.constant 0 : index
    %c0_20 = arith.constant 0 : index
    %56 = vector.load %arg5[%c0_19, %c0_20] : memref<64x34xf32, #tpu.memory_space<vmem>>, vector<64x34xf32>
    %cst_21 = arith.constant dense<0.000000e+00> : vector<32x34xf32>
    %57 = tpu.matmul %55, %56, %cst_21 {dimension_numbers = #tpu.dot_dimension_numbers<[1], [0], [0], [1], [0, 0, 1, 1], [], []>} : vector<32x64xf32>, vector<64x34xf32>, vector<32x34xf32> -> vector<32x34xf32>
    %58 = vector.extract_strided_slice %57 {offsets = [0, 0], sizes = [32, 2], strides = [1, 1]} : vector<32x34xf32> to vector<32x2xf32>
    %59 = vector.extract_strided_slice %57 {offsets = [0, 2], sizes = [32, 16], strides = [1, 1]} : vector<32x34xf32> to vector<32x16xf32>
    %60 = vector.extract_strided_slice %57 {offsets = [0, 18], sizes = [32, 16], strides = [1, 1]} : vector<32x34xf32> to vector<32x16xf32>
    %c0_22 = arith.constant 0 : index
    %c0_23 = arith.constant 0 : index
    %61 = vector.load %arg6[%c0_22, %c0_23] : memref<2x64xf32, #tpu.memory_space<vmem>>, vector<2x64xf32>
    %cst_24 = arith.constant dense<0.000000e+00> : vector<32x64xf32>
    %62 = tpu.matmul %58, %61, %cst_24 {dimension_numbers = #tpu.dot_dimension_numbers<[1], [0], [0], [1], [0, 0, 1, 1], [], []>} : vector<32x2xf32>, vector<2x64xf32>, vector<32x64xf32> -> vector<32x64xf32>
    %c0_25 = arith.constant 0 : index
    %c0_26 = arith.constant 0 : index
    %63 = vector.load %arg7[%c0_25, %c0_26] : memref<1x64xf32, #tpu.memory_space<vmem>>, vector<1x64xf32>
    %64 = vector.broadcast %63 : vector<1x64xf32> to vector<32x64xf32>
    %65 = arith.addf %62, %64 : vector<32x64xf32>
    %cst_27 = arith.constant 2.000000e+01 : f32
    %66 = vector.broadcast %cst_27 : f32 to vector<32x64xf32>
    %67 = arith.minimumf %65, %66 : vector<32x64xf32>
    %cst_28 = arith.constant 2.000000e+01 : f32
    %68 = vector.broadcast %cst_28 : f32 to vector<32x64xf32>
    %69 = arith.cmpf ogt, %65, %68 : vector<32x64xf32>
    %70 = math.exp %67 : vector<32x64xf32>
    %cst_29 = arith.constant 1.000000e+00 : f32
    %71 = vector.broadcast %cst_29 : f32 to vector<32x64xf32>
    %72 = arith.addf %71, %70 : vector<32x64xf32>
    %73 = math.log %72 : vector<32x64xf32>
    %74 = arith.select %69, %65, %73 : vector<32x64xi1>, vector<32x64xf32>
    %c0_30 = arith.constant 0 : index
    %c0_31 = arith.constant 0 : index
    %c0_32 = arith.constant 0 : index
    %75 = vector.load %arg8[%c0_30, %c0_31, %c0_32] : memref<1x32x64xf32, #tpu.memory_space<vmem>>, vector<1x32x64xf32>
    %76 = vector.shape_cast %75 : vector<1x32x64xf32> to vector<32x64xf32>
    %77 = vector.shape_cast %55 : vector<32x64xf32> to vector<1x32x64xf32>
    tpu.vector_store %arg8[%c0_30, %c0_31, %c0_32], %77 {strides = array<i32>} : memref<1x32x64xf32, #tpu.memory_space<vmem>>, vector<1x32x64xf32>,
    %c0_33 = arith.constant 0 : index
    %c0_34 = arith.constant 0 : index
    %c0_35 = arith.constant 0 : index
    %78 = vector.load %arg9[%c0_33, %c0_34, %c0_35] : memref<1x32x64xf32, #tpu.memory_space<vmem>>, vector<1x32x64xf32>
    %79 = vector.shape_cast %78 : vector<1x32x64xf32> to vector<32x64xf32>
    %80 = vector.shape_cast %74 : vector<32x64xf32> to vector<1x32x64xf32>
    tpu.vector_store %arg9[%c0_33, %c0_34, %c0_35], %80 {strides = array<i32>} : memref<1x32x64xf32, #tpu.memory_space<vmem>>, vector<1x32x64xf32>,
    %c0_36 = arith.constant 0 : index
    %c0_37 = arith.constant 0 : index
    %c0_38 = arith.constant 0 : index
    %81 = vector.load %arg10[%c0_36, %c0_37, %c0_38] : memref<1x32x16xf32, #tpu.memory_space<vmem>>, vector<1x32x16xf32>
    %82 = vector.shape_cast %81 : vector<1x32x16xf32> to vector<32x16xf32>
    %83 = vector.shape_cast %59 : vector<32x16xf32> to vector<1x32x16xf32>
    tpu.vector_store %arg10[%c0_36, %c0_37, %c0_38], %83 {strides = array<i32>} : memref<1x32x16xf32, #tpu.memory_space<vmem>>, vector<1x32x16xf32>,
    %c0_39 = arith.constant 0 : index
    %c0_40 = arith.constant 0 : index
    %c0_41 = arith.constant 0 : index
    %84 = vector.load %arg11[%c0_39, %c0_40, %c0_41] : memref<1x32x16xf32, #tpu.memory_space<vmem>>, vector<1x32x16xf32>
    %85 = vector.shape_cast %84 : vector<1x32x16xf32> to vector<32x16xf32>
    %86 = vector.shape_cast %60 : vector<32x16xf32> to vector<1x32x16xf32>
    tpu.vector_store %arg11[%c0_39, %c0_40, %c0_41], %86 {strides = array<i32>} : memref<1x32x16xf32, #tpu.memory_space<vmem>>, vector<1x32x16xf32>,
    %c0_42 = arith.constant 0 : index
    %c0_43 = arith.constant 0 : index
    %c0_44 = arith.constant 0 : index
    %87 = vector.load %arg12[%c0_42, %c0_43, %c0_44] : memref<1x32x64xf32, #tpu.memory_space<vmem>>, vector<1x32x64xf32>
    %88 = vector.shape_cast %87 : vector<1x32x64xf32> to vector<32x64xf32>
    %89 = vector.shape_cast %5 : vector<32x64xf32> to vector<1x32x64xf32>
    tpu.vector_store %arg12[%c0_42, %c0_43, %c0_44], %89 {strides = array<i32>} : memref<1x32x64xf32, #tpu.memory_space<vmem>>, vector<1x32x64xf32>,
    return
  }
  func.func @transform_0(%arg0: i32) -> (i32, i32, i32) {
    %c0_i32 = arith.constant 0 : i32
    %c0_i32_0 = arith.constant 0 : i32
    %c0_i32_1 = arith.constant 0 : i32
    return %arg0, %c0_i32, %c0_i32_0 : i32, i32, i32
  }
  func.func @transform_1(%arg0: i32) -> (i32, i32) {
    %c0_i32 = arith.constant 0 : i32
    %c0_i32_0 = arith.constant 0 : i32
    %c0_i32_1 = arith.constant 0 : i32
    return %c0_i32, %c0_i32_0 : i32, i32
  }
  func.func @transform_2(%arg0: i32) -> (i32, i32) {
    %c0_i32 = arith.constant 0 : i32
    %c0_i32_0 = arith.constant 0 : i32
    %c0_i32_1 = arith.constant 0 : i32
    return %c0_i32, %c0_i32_0 : i32, i32
  }
  func.func @transform_3(%arg0: i32) -> (i32, i32) {
    %c0_i32 = arith.constant 0 : i32
    %c0_i32_0 = arith.constant 0 : i32
    %c0_i32_1 = arith.constant 0 : i32
    return %c0_i32, %c0_i32_0 : i32, i32
  }
  func.func @transform_4(%arg0: i32) -> (i32, i32) {
    %c0_i32 = arith.constant 0 : i32
    %c0_i32_0 = arith.constant 0 : i32
    %c0_i32_1 = arith.constant 0 : i32
    return %c0_i32, %c0_i32_0 : i32, i32
  }
  func.func @transform_5(%arg0: i32) -> (i32, i32) {
    %c0_i32 = arith.constant 0 : i32
    %c0_i32_0 = arith.constant 0 : i32
    %c0_i32_1 = arith.constant 0 : i32
    return %c0_i32, %c0_i32_0 : i32, i32
  }
  func.func @transform_6(%arg0: i32) -> (i32, i32) {
    %c0_i32 = arith.constant 0 : i32
    %c0_i32_0 = arith.constant 0 : i32
    %c0_i32_1 = arith.constant 0 : i32
    return %c0_i32, %c0_i32_0 : i32, i32
  }
  func.func @transform_7(%arg0: i32) -> (i32, i32, i32) {
    %c0_i32 = arith.constant 0 : i32
    %c0_i32_0 = arith.constant 0 : i32
    %c0_i32_1 = arith.constant 0 : i32
    return %arg0, %c0_i32, %c0_i32_0 : i32, i32, i32
  }
  func.func @transform_8(%arg0: i32) -> (i32, i32, i32) {
    %c0_i32 = arith.constant 0 : i32
    %c0_i32_0 = arith.constant 0 : i32
    %c0_i32_1 = arith.constant 0 : i32
    return %arg0, %c0_i32, %c0_i32_0 : i32, i32, i32
  }
  func.func @transform_9(%arg0: i32) -> (i32, i32, i32) {
    %c0_i32 = arith.constant 0 : i32
    %c0_i32_0 = arith.constant 0 : i32
    %c0_i32_1 = arith.constant 0 : i32
    return %arg0, %c0_i32, %c0_i32_0 : i32, i32, i32
  }
  func.func @transform_10(%arg0: i32) -> (i32, i32, i32) {
    %c0_i32 = arith.constant 0 : i32
    %c0_i32_0 = arith.constant 0 : i32
    %c0_i32_1 = arith.constant 0 : i32
    return %arg0, %c0_i32, %c0_i32_0 : i32, i32, i32
  }
  func.func @transform_11(%arg0: i32) -> (i32, i32, i32) {
    %c0_i32 = arith.constant 0 : i32
    %c0_i32_0 = arith.constant 0 : i32
    %c0_i32_1 = arith.constant 0 : i32
    return %arg0, %c0_i32, %c0_i32_0 : i32, i32, i32
  }
}

</mosaic_0001>

<bundles_post_ra>
// kernel: tpu_custom_call.1
= control target key start
LH: loop header
LB: loop body
LE: loop exit
PB: predicated region body
PF: predicated region fallthrough
CT: control target
= control target key end

     0   :  { %s1993_s0 = inlined_call_operand.vmem [shape: f32[2,32,32], index: 0, kind: input, shape index: {}]   ;;  %s1994_s1 = inlined_call_operand.vmem [shape: f32[32,128], index: 1, kind: input, shape index: {}]   ;;  %s1995_s2 = inlined_call_operand.vmem [shape: f32[4,64], index: 2, kind: input, shape index: {}]   ;;  %s1996_s3 = inlined_call_operand.vmem [shape: f32[1,64], index: 3, kind: input, shape index: {}]   ;;  %s1997_s4 = inlined_call_operand.vmem [shape: f32[64,34], index: 4, kind: input, shape index: {}]   ;;  %s1998_s5 = inlined_call_operand.vmem [shape: f32[2,64], index: 5, kind: input, shape index: {}]   ;;  %s1999_s6 = inlined_call_operand.vmem [shape: f32[1,64], index: 6, kind: input, shape index: {}]   ;;  %s2000_s7 = inlined_call_operand.hbm [shape: f32[2,32,64], index: 7, kind: output, shape index: {0}]   ;;  %s2001_s8 = inlined_call_operand.hbm [shape: f32[2,32,64], index: 8, kind: output, shape index: {1}]   ;;  %s2002_s9 = inlined_call_operand.vmem [shape: f32[2,32,16], index: 9, kind: output, shape index: {2}]   ;;  %s2003_s10 = inlined_call_operand.vmem [shape: f32[2,32,16], index: 10, kind: output, shape index: {3}]   ;;  %s2004_s11 = inlined_call_operand.hbm [shape: f32[2,32,64], index: 11, kind: output, shape index: {4}]  }
   0x1   :  { %2009 = sst [smem:[#allocation9_spill]] %s1993_s0 }
   0x2   :  { %2010 = sst [smem:[#allocation10_spill]] %s1994_s1 }
   0x3   :  { %2011 = sst [smem:[#allocation11_spill]] %s1995_s2 }
   0x4   :  { %2012 = sst [smem:[#allocation12_spill]] %s1996_s3 }
   0x5   :  { %17 = vsyncpa [#allocation3], 0 }
   0x6   :  { %19 = vsyncpa [#allocation3 + $0x1], 0 }
   0x7   :  { %20 = vsyncpa [#allocation5], 0 }
   0x8   :  { %22 = vsyncpa [#allocation5 + $0x1], 0  ;;  %s1659_s17 = smov 0   ;;  %s1661_s18 = smov 0  }
   0x9   :  { %s1663_s19 = smov 0   ;;  %s1665_s20 = smov 0  }
   0xa LB: > { %s1680_s21 = sadd.s32 4294967295, %s1589_s20   ;;  %s2005_s22 = sadd.s32 4294967294, %s1589_s20   ;;  %s1589_s20 = sphi %s1665_s20, %s2025_s20   ;;  %s1585_s19 = sphi %s1663_s19, %s2024_s19   ;;  %s1581_s18 = sphi %s1661_s18, %s2023_s18   ;;  %s1577_s17 = sphi %s1659_s17, %s2022_s17  }
   0xb   : > { %s1684_s23 = sadd.s32 1, %s1589_s20   ;;  %s187_s24 = sadd.s32 1, %s1585_s19 }
   0xc   : > { %s184_s25 = ssub.s32 %s1589_s20, %s1684_s23  ;;  %p197_p0 = scmp.ne.s32.totalorder %s1585_s19, %s1581_s18 }
   0xd   : > { %p185_p1 = scmp.eq.s32.totalorder %s184_s25, 0  ;;  %p198_p2 = scmp.eq.s32.totalorder %s1680_s21, 1 }
   0xe   : > { %p203_p3 = scmp.ne.s32.totalorder %s1581_s18, %s1577_s17  ;;  %p204_p4 = scmp.eq.s32.totalorder %s2005_s22, 1 }
   0xf   : > { %s1697_s26 = scalar_select %p185_p1, %s1585_s19, %s187_s24  }
  0x10   : > { %p1699_p5 = por %p198_p2, %p197_p0  ;;  %p1703_p6 = por %p204_p4, %p203_p3 }
  0x11   : > { %p1246_p7 = scmp.ge.s32.totalorder %s1589_s20, 1  ;;  %p352_p8 = scmp.lt.s32.totalorder %s1589_s20, 3 }
  0x13   : > { %p353_p9 = pnand %p1246_p7, %p352_p8 }
  0x14   : > { %s2015_s1 = sld [smem:[#allocation10_spill]] (!%p353_p9)  ;;  %p412_p10 = scmp.lt.s32.totalorder (!%p353_p9), %s1680_s21, 1  ;;  %vm435_vm0 = vcmask (!%p353_p9), 261120   ;;  %v689_v10 = vld [vmem:[%s1997_s4] sm:$0xff] (!%p353_p9)  ;;  %v690_v11 = vld [vmem:[%s1997_s4 + $0x8] sm:$0xff] (!%p353_p9)  ;;  %v691_v12 = vld [vmem:[%s1997_s4 + $0x10] sm:$0xff] (!%p353_p9)  ;;  %v534_v22 = vlaneseq (!%p353_p9) }
  0x15   : > { %356 = sbr.rel (%p353_p9) target bundleno = 804 (0x324), region = 48  ;;  %s2016_s0 = sld [smem:[#allocation9_spill]] (!%p353_p9)  ;;  %v1365_v13 = vpack.c.bf16 (!%p353_p9), %v690_v11, %v689_v10  ;;  %v692_v14 = vld [vmem:[%s1997_s4 + $0x18] sm:$0xff] (!%p353_p9)  ;;  %v693_v16 = vld [vmem:[%s1997_s4 + $0x20] sm:$0xff] (!%p353_p9)  ;;  %v694_v17 = vld [vmem:[%s1997_s4 + $0x28] sm:$0xff] (!%p353_p9)  ;;  %vm816_vm1 = vcmask (!%p353_p9), 1041408  }
  0x16   : > { %v1369_v15 = vpack.c.bf16 (!%p353_p9), %v692_v14, %v691_v12  ;;  %v1373_v18 = vpack.c.bf16 (!%p353_p9), %v694_v17, %v693_v16  ;;  %v695_v19 = vld [vmem:[%s1997_s4 + $0x30] sm:$0xff] (!%p353_p9)  ;;  %v696_v20 = vld [vmem:[%s1997_s4 + $0x38] sm:$0xff] (!%p353_p9)  ;;  %v1753_v23 = vshrl.u32 (!%p353_p9), %v534_v22, 7  ;;  %s2017_s2 = sld [smem:[#allocation11_spill]] (!%p353_p9)  ;;  %v795_v27 = vld [vmem:[%s1998_s5] sm:$0x3] (!%p353_p9) }
  0x17   : > { %1366 = vmatprep.subr.bf16.mxu1 (!%p353_p9), %v1365_v13  ;;  %v1377_v21 = vpack.c.bf16 (!%p353_p9), %v696_v20, %v695_v19  ;;  %s1591_s14 = smov (!%p353_p9), 64   ;;  %s2018_s3 = sld [smem:[#allocation12_spill]] (!%p353_p9)  ;;  %vm697_vm10 = vcmask (!%p353_p9), 523264   ;;  %vm803_vm13 = vcmask (!%p353_p9), 15360   ;;  %vm957_vm14 = vcmask (!%p353_p9), 130048  }
  0x18   : > { %1368 = vmatpush3.bf16.msra.mxu1 (!%p353_p9), %v1365_v13  ;;  %v542_v24 = vsub.s32 (!%p353_p9), 3, %v1753_v23  ;;  %v577_v26 = vsub.s32 (!%p353_p9), 2, %v1753_v23  ;;  %v606_v29 = vsub.s32 (!%p353_p9), 1, %v1753_v23  ;;  %v635_v30 = vsub.s32 (!%p353_p9), 0, %v1753_v23  ;;  %s2006_s24 = sand.u32 (!%p353_p9), 1, %s1581_s18   ;;  %s1592_s30 = smov (!%p353_p9), 126  }
  0x19   : > { %1370 = vmatprep.subr.bf16.mxu1 (!%p353_p9), %v1369_v15  ;;  %vm566_vm2 = vcmp.lt.s32.totalorder (!%p353_p9), %v1753_v23, 1  ;;  %vm595_vm3 = vcmp.lt.s32.totalorder (!%p353_p9), %v1753_v23, 2  ;;  %vm624_vm4 = vcmp.lt.s32.totalorder (!%p353_p9), %v1753_v23, 3  ;;  %vm558_vm5 = vcmp.ge.s32.totalorder (!%p353_p9), %v1753_v23, 1  ;;  %s1593_s12 = smov (!%p353_p9), 110   ;;  %s1594_s16 = smov (!%p353_p9), [#allocation2]  }
  0x1a   : > { %v431_v0 = vld [vmem:[%s2015_s1] sm:$0xff] (!%p353_p9)  ;;  %v432_v1 = vld [vmem:[%s2015_s1 + $0x8] sm:$0xff] (!%p353_p9)  ;;  %v433_v2 = vld [vmem:[%s2015_s1 + $0x10] sm:$0xff] (!%p353_p9)  ;;  %vm587_vm6 = vcmp.ge.s32.totalorder (!%p353_p9), %v1753_v23, 2  ;;  %vm616_vm7 = vcmp.ge.s32.totalorder (!%p353_p9), %v1753_v23, 3 }
  0x1b   : > { %v1357_v3 = vpack.c.bf16 (!%p353_p9), %v432_v1, %v431_v0  ;;  %v434_v4 = vld [vmem:[%s2015_s1 + $0x18] sm:$0xff] (!%p353_p9) }
  0x1c   : > { %v1361_v5 = vpack.c.bf16 %v434_v4, %v433_v2  ;;  %s413_s25 = scalar_select %p412_p10, %s1680_s21, 1  ;;  %1372 = vmatpush3.bf16.msra.mxu1 %v1369_v15  ;;  %v533_v25 = vld [vmem:[%s2017_s2] sm:$0xf] }
  0x1d   : > { %1358 = vmatprep.subr.bf16.mxu0 %v1357_v3  ;;  %1374 = vmatprep.subr.bf16.mxu1 %v1373_v18  ;;  %v543_v28 = vrot.slane %v533_v25, %v542_v24  ;;  %v578_v32 = vrot.slane %v533_v25, %v577_v26  ;;  %v1260_v38 = vld [vmem:[%s2018_s3] ss:$0 sm:$0xff]  ;;  %v607_v43 = vrot.slane %v533_v25, %v606_v29  ;;  %s1471_s2 = sshll.u32 %s1594_s16, 4  ;;  %s1472_s2 = int_to_ptr.vmem [resolvable:$false] %s1471_s2 }
  0x1e   : > { %1360 = vmatpush3.bf16.msra.mxu0 %v1357_v3  ;;  %s1723_s29 = sshll.u32 %s413_s25, 5  ;;  %v636_v44 = vrot.slane %v533_v25, %v635_v30  ;;  %s1811_s25 = sshll.u32 %s2006_s24, 5 }
  0x1f   : > { %1362 = vmatprep.subr.bf16.mxu0 %v1361_v5  ;;  %s416_s13 = scalar_lea.vmem %s2016_s0, %s1723_s29  ;;  %s1814_s22 = scalar_lea.vmem [#allocation2], %s1811_s25 }
  0x20   : > { %v427_v6 = vld [vmem:[%s416_s13] sm:$0xff]  ;;  %v428_v7 = vld [vmem:[%s416_s13 + $0x8] sm:$0xff]  ;;  %v429_v8 = vld [vmem:[%s416_s13 + $0x10] sm:$0xff]  ;;  %1376 = vmatpush3.bf16.msra.mxu1 %v1373_v18  ;;  %s1829_s0 = scalar_lea.vmem [#allocation6], %s1811_s25  ;;  %s421_s15 = scalar_lea.vmem %s2002_s9, %s1723_s29 }
  0x21   : > { %1321 = vmatprep.mubr.msk.f32.mxu0 %vm435_vm0, %v427_v6  ;;  %v430_v9 = vld [vmem:[%s416_s13 + $0x18] sm:$0xff]  ;;  %1378 = vmatprep.subr.bf16.mxu1 %v1377_v21  ;;  %s426_s1 = scalar_lea.vmem %s2003_s10, %s1723_s29  ;;  %s1857_s29 = sshll.u32 %s1680_s21, 9 }
  0x22   : > { %1364 = vmatpush3.bf16.msra.mxu0 %v1361_v5  ;;  %s2019_s13 = sand.u32 1, %s1581_s18   ;;  %s1473_s3 = scalar_lea.vmem %s1472_s2, 1024 }
  0x23   : > { %1349 = vmatprep.subr.msk.mxu0 %vm816_vm1, %v795_v27 }
  0x24   : > { %1380 = vmatpush3.bf16.msra.mxu1 %v1377_v21 }
  0x25   : > { %1322 = vmatmul.mubr.msk.f32.vlgmr.msra.gmra.mrb[0].mxu0 %vm435_vm0, %v428_v7 }
  0x26   : > { %1324 = vmatprep.mubr.msk.f32.mxu0 %vm435_vm0, %v429_v8  ;;  %1350 = vmatpush3.msk.msra.mxu0 %vm816_vm1, %v795_v27 }
  0x29   : > { %1325 = vmatmul.mubr.msk.f32.gmra.mrb[2].mxu0 %vm435_vm0, %v430_v9 }
  0xf8   : > { %v1323_v31 = vpop.f32.mrb[0].mxu0 }
  0xf9   : > { %v545_v33 = vmul.f32 %v1323_v31, %v543_v28  ;;  %v563_v34 = vrot.slane %v1323_v31, 7  ;;  %v592_v35 = vrot.slane %v1323_v31, 6  ;;  %v621_v36 = vrot.slane %v1323_v31, 5  ;;  %984 = vrot.lane.b32.xlu0 %v1323_v31, %s1591_s14  ;;  %v514_v37 = vpop.f32.mrb[1].mxu0 }
  0xfa   : > { %v544_v39 = vmul.f32 %v543_v28, %v514_v37  ;;  %v562_v40 = vrot.slane %v514_v37, 7  ;;  %v591_v41 = vrot.slane %v514_v37, 6  ;;  %v620_v42 = vrot.slane %v514_v37, 5 }
  0xfb   : > { %v555_v49 = vadd.f32 %v1260_v38, %v545_v33 }
  0xfc   : > { %v569_v45 = vsel %vm566_vm2, %v562_v40, %v563_v34  ;;  %v598_v46 = vsel %vm595_vm3, %v591_v41, %v592_v35  ;;  %v627_v47 = vsel %vm624_vm4, %v620_v42, %v621_v36  ;;  %v1326_v48 = vpop.f32.mrb[2].mxu0  ;;  %v554_v50 = vadd.f32 %v1260_v38, %v544_v39 }
  0xfd   : > { %v580_v51 = vmul.f32 %v578_v32, %v569_v45  ;;  %v565_v52 = vrot.slane %v1326_v48, 7  ;;  %982 = vrot.lane.b32.xlu0 %v514_v37, %s1591_s14  ;;  %988 = vrot.lane.b32.xlu1 %v1326_v48, %s1591_s14  ;;  %v524_v53 = vpop.f32.mrb[3].mxu0  ;;  %v594_v54 = vrot.slane %v1326_v48, 6  ;;  %v623_v55 = vrot.slane %v1326_v48, 5 }
  0xfe   : > { %v546_v56 = vmul.f32 %v543_v28, %v524_v53  ;;  %v564_v57 = vrot.slane %v524_v53, 7  ;;  %v547_v58 = vmul.f32 %v1326_v48, %v543_v28  ;;  %v593_v60 = vrot.slane %v524_v53, 6 }
  0xff   : > { %v570_v59 = vsel %vm566_vm2, %v565_v52, %v562_v40  ;;  %v622_v61 = vrot.slane %v524_v53, 5  ;;  %v609_v2 = vmul.f32 %v607_v43, %v598_v46  ;;  %v599_v12 = vsel %vm595_vm3, %v594_v54, %v591_v41 }
 0x100   : > { %v556_v62 = vadd.f32 %v1260_v38, %v546_v56  ;;  %v567_v63 = vsel %vm566_vm2, %v564_v57, %v565_v52  ;;  %v568_v0 = vsel %vm566_vm2, %v563_v34, %v564_v57  ;;  %v571_v1 = vsel %vm558_vm5, %v570_v59, 0.0 }
 0x101   : > { %v581_v3 = vmul.f32 %v578_v32, %v568_v0  ;;  %v596_v4 = vsel %vm595_vm3, %v593_v60, %v594_v54  ;;  %v597_v5 = vsel %vm595_vm3, %v592_v35, %v593_v60  ;;  %986 = vrot.lane.b32.xlu1 %v524_v53, %s1591_s14  ;;  %v582_v6 = vmul.f32 %v578_v32, %v567_v63  ;;  %s1869_s14 = scalar_lea.sflag [#allocation3], %s2019_s13 }
 0x102   : > { %v610_v7 = vmul.f32 %v607_v43, %v597_v5  ;;  %v625_v8 = vsel %vm624_vm4, %v622_v61, %v623_v55  ;;  %v626_v9 = vsel %vm624_vm4, %v621_v36, %v622_v61  ;;  %v579_v11 = vmul.f32 %v578_v32, %v571_v1 }
 0x103   : > { %v585_v10 = vadd.f32 %v581_v3, %v556_v62  ;;  %v628_v13 = vsel %vm624_vm4, %v623_v55, %v620_v42  ;;  %v557_v14 = vadd.f32 %v1260_v38, %v547_v58  ;;  %v600_v15 = vsel %vm587_vm6, %v599_v12, 0.0 }
 0x104   : > { %v629_v16 = vsel %vm616_vm7, %v628_v13, 0.0  ;;  %v584_v17 = vadd.f32 %v580_v51, %v555_v49  ;;  %v611_v18 = vmul.f32 %v607_v43, %v596_v4  ;;  %v583_v19 = vadd.f32 %v579_v11, %v554_v50 }
 0x105   : > { %v608_v20 = vmul.f32 %v607_v43, %v600_v15  ;;  %v614_v21 = vadd.f32 %v610_v7, %v585_v10  ;;  %v638_v24 = vmul.f32 %v636_v44, %v627_v47  ;;  %v639_v25 = vmul.f32 %v636_v44, %v626_v9 }
 0x106   : > { %v613_v22 = vadd.f32 %v609_v2, %v584_v17  ;;  %v586_v26 = vadd.f32 %v582_v6, %v557_v14  ;;  %v637_v28 = vmul.f32 %v636_v44, %v629_v16  ;;  %v640_v33 = vmul.f32 %v636_v44, %v625_v8 }
 0x107   : > { %v612_v27 = vadd.f32 %v608_v20, %v583_v19  ;;  %v643_v30 = vadd.f32 %v639_v25, %v614_v21 }
 0x108   : > { %v642_v29 = vadd.f32 %v638_v24, %v613_v22  ;;  %v615_v31 = vadd.f32 %v611_v18, %v586_v26 }
 0x109   : > { %v641_v32 = vadd.f32 %v637_v28, %v612_v27  ;;  %v647_v35 = vand.u32 2147483647, %v643_v30  ;;  %vm663_vm11 = vcmp.ge.f32.partialorder %v643_v30, 0.0 }
 0x10a   : > { %v646_v34 = vand.u32 2147483647, %v642_v29  ;;  %v644_v36 = vadd.f32 %v640_v33, %v615_v31  ;;  %vm662_vm8 = vcmp.ge.f32.partialorder %v642_v29, 0.0 }
 0x10b   : > { %v645_v23 = vand.u32 2147483647, %v641_v32  ;;  %v651_v38 = vsub.f32 0.0, %v647_v35  ;;  %vm661_vm9 = vcmp.ge.f32.partialorder %v641_v32, 0.0 }
 0x10c   : > { %v650_v37 = vsub.f32 0.0, %v646_v34  ;;  %v648_v40 = vand.u32 2147483647, %v644_v36  ;;  %vm664_vm12 = vcmp.ge.f32.partialorder %v644_v36, 0.0 }
 0x10d   : > { %v649_v39 = vsub.f32 0.0, %v645_v23  ;;  %v657_v42 = vmul.f32 1.442695, %v651_v38 }
 0x10e   : > { %v655_v41 = vmul.f32 1.442695, %v650_v37  ;;  %v652_v45 = vsub.f32 0.0, %v648_v40 }
 0x10f   : > { %v653_v43 = vmul.f32 1.442695, %v649_v39 }
 0x110   : > { %1435 = vpow2.f32 %v655_v41  ;;  %v659_v46 = vmul.f32 1.442695, %v652_v45 }
 0x111   : > { %1437 = vpow2.f32 %v653_v43 }
 0x112   : > { %1439 = vpow2.f32 %v657_v42 }
 0x113   : > { %1441 = vpow2.f32 %v659_v46 }
 0x11a   : > { %v1436_v44 = vpop.eup %1435 }
 0x11b   : > { %v1438_v47 = vpop.eup %1437  ;;  %v666_v48 = vadd.f32 1.0, %v1436_v44 }
 0x11c   : > { %v1440_v49 = vpop.eup %1439  ;;  %v665_v50 = vadd.f32 1.0, %v1438_v47 }
 0x11d   : > { %v1442_v51 = vpop.eup %1441  ;;  %1443 = vrcp.f32 %v666_v48  ;;  %v667_v52 = vadd.f32 1.0, %v1440_v49 }
 0x11e   : > { %1445 = vrcp.f32 %v665_v50  ;;  %v668_v53 = vadd.f32 1.0, %v1442_v51 }
 0x11f   : > { %1447 = vrcp.f32 %v667_v52 }
 0x120   : > { %1449 = vrcp.f32 %v668_v53 }
 0x127   : > { %v1444_v54 = vpop.eup %1443 }
 0x128   : > { %v1446_v55 = vpop.eup %1445  ;;  %v678_v56 = vmul.f32 %v1444_v54, %v1436_v44 }
 0x129   : > { %v1448_v57 = vpop.eup %1447  ;;  %v677_v58 = vmul.f32 %v1446_v55, %v1438_v47 }
 0x12a   : > { %v1450_v59 = vpop.eup %1449  ;;  %v682_v60 = vsel %vm662_vm8, %v1444_v54, %v678_v56  ;;  %v679_v61 = vmul.f32 %v1448_v57, %v1440_v49 }
 0x12b   : > { %v681_v62 = vsel %vm661_vm9, %v1446_v55, %v677_v58  ;;  %v686_v63 = vmul.f32 %v682_v60, %v642_v29  ;;  %v680_v0 = vmul.f32 %v1450_v59, %v1442_v51 }
 0x12c   : > { %v685_v1 = vmul.f32 %v681_v62, %v641_v32  ;;  %v683_v2 = vsel %vm663_vm11, %v1448_v57, %v679_v61 }
 0x12d   : > { %938 = vst.msk [vmem:[%s1814_s22 + $0x8] sm:$0xff] %vm697_vm10, %v686_v63  ;;  %v687_v3 = vmul.f32 %v683_v2, %v643_v30  ;;  %v684_v4 = vsel %vm664_vm12, %v1450_v59, %v680_v0 }
 0x12e   : > { %1343 = vmatprep.mubr.msk.f32.mxu1 %vm697_vm10, %v685_v1  ;;  %937 = vst.msk [vmem:[%s1814_s22] sm:$0xff] %vm697_vm10, %v685_v1  ;;  %v688_v5 = vmul.f32 %v684_v4, %v644_v36 }
 0x12f   : > { %1344 = vmatmul.mubr.msk.f32.vlgmr.msra.gmra.mrb[0].mxu1 %vm697_vm10, %v686_v63  ;;  %939 = vst.msk [vmem:[%s1814_s22 + $0x10] sm:$0xff] %vm697_vm10, %v687_v3 }
 0x130   : > { %1346 = vmatprep.mubr.msk.f32.mxu1 %vm697_vm10, %v687_v3  ;;  %940 = vst.msk [vmem:[%s1814_s22 + $0x18] sm:$0xff] %vm697_vm10, %v688_v5 }
 0x133   : > { %1347 = vmatmul.mubr.msk.f32.gmra.mrb[2].mxu1 %vm697_vm10, %v688_v5 }
 0x16b   : > { %v985_v6 = vpop.permute.xlu0 %984 }
 0x16c   : > { %995 = vst.msk [vmem:[%s1829_s0 + $0x8] sm:$0xff] %vm697_vm10, %v985_v6 }
 0x16f   : > { %v983_v7 = vpop.permute.xlu0 %982  ;;  %v989_v8 = vpop.permute.xlu1 %988 }
 0x170   : > { %994 = vst.msk [vmem:[%s1829_s0] sm:$0xff] %vm697_vm10, %v983_v7  ;;  %997 = vst.msk [vmem:[%s1829_s0 + $0x18] sm:$0xff] %vm697_vm10, %v989_v8 }
 0x173   : > { %v987_v9 = vpop.permute.xlu1 %986 }
 0x174   : > { %996 = vst.msk [vmem:[%s1829_s0 + $0x10] sm:$0xff] %vm697_vm10, %v987_v9 }
 0x202   : > { %v1345_v10 = vpop.f32.mrb[0].mxu1 }
 0x203   : > { %v776_v11 = vpop.f32.mrb[1].mxu1  ;;  %947 = vrot.lane.b32.xlu1 %v1345_v10, %s1592_s30 }
 0x204   : > { %945 = vrot.lane.b32.xlu0 %v776_v11, %s1592_s30  ;;  %1351 = vmatprep.mubr.msk.f32.mxu0 %vm803_vm13, %v776_v11 }
 0x205   : > { %1352 = vmatmul.mubr.msk.f32.vlgmr.msra.gmra.mrb[4].mxu0 %vm803_vm13, %v1345_v10 }
 0x206   : > { %v1348_v12 = vpop.f32.mrb[2].mxu1 }
 0x207   : > { %964 = vrot.lane.b32.xlu1 %v1345_v10, %s1593_s12  ;;  %v786_v13 = vpop.f32.mrb[3].mxu1 }
 0x208   : > { %962 = vrot.lane.b32.xlu0 %v776_v11, %s1593_s12  ;;  %1354 = vmatprep.mubr.msk.f32.mxu0 %vm803_vm13, %v786_v13 }
 0x209   : > { %1355 = vmatmul.mubr.msk.f32.gmra.mrb[6].mxu0 %vm803_vm13, %v1348_v12 }
 0x20b   : > { %951 = vrot.lane.b32.xlu1 %v1348_v12, %s1592_s30 }
 0x20c   : > { %949 = vrot.lane.b32.xlu0 %v786_v13, %s1592_s30  ;;  %s1032_s30 = sshll.u32 %s1814_s22, 4  ;;  %s1854_s30 = int_to_ptr.vmem [resolvable:$true] %s1032_s30 }
 0x20d   : > { %p1474_p0 = scmp.lt.s32.totalorder %s1854_s30, %s1472_s2 }
 0x20f   : > { %968 = vrot.lane.b32.xlu1 %v1348_v12, %s1593_s12 }
 0x210   : > { %966 = vrot.lane.b32.xlu0 %v786_v13, %s1593_s12  ;;  %s1865_s12 = scalar_lea.hbm %s2000_s7, %s1857_s29 }
 0x275   : > { %v948_v14 = vpop.permute.xlu1 %947 }
 0x276   : > { %959 = vst.msk [vmem:[%s421_s15 + $0x8] sm:$0xff] %vm957_vm14, %v948_v14  ;;  %v946_v15 = vpop.permute.xlu0 %945 }
 0x277   : > { %958 = vst.msk [vmem:[%s421_s15] sm:$0xff] %vm957_vm14, %v946_v15 }
 0x279   : > { %v965_v16 = vpop.permute.xlu1 %964 }
 0x27a   : > { %975 = vst.msk [vmem:[%s426_s1 + $0x8] sm:$0xff] %vm957_vm14, %v965_v16  ;;  %v963_v17 = vpop.permute.xlu0 %962 }
 0x27b   : > { %974 = vst.msk [vmem:[%s426_s1] sm:$0xff] %vm957_vm14, %v963_v17 }
 0x27d   : > { %v952_v18 = vpop.permute.xlu1 %951 }
 0x27e   : > { %961 = vst.msk [vmem:[%s421_s15 + $0x18] sm:$0xff] %vm957_vm14, %v952_v18  ;;  %v950_v19 = vpop.permute.xlu0 %949 }
 0x27f   : > { %960 = vst.msk [vmem:[%s421_s15 + $0x10] sm:$0xff] %vm957_vm14, %v950_v19  ;;  %s1467_s15 = scalar_lea.vmem %s1854_s30, 512 }
 0x280   : > { %p1468_p11 = scmp.ne.s32.totalorder %s1854_s30, %s1467_s15  ;;  %p1475_p1 = scmp.lt.s32.totalorder %s1473_s3, %s1467_s15 }
 0x281   : > { %v969_v20 = vpop.permute.xlu1 %968 }
 0x282   : > { %977 = vst.msk [vmem:[%s426_s1 + $0x18] sm:$0xff] %vm957_vm14, %v969_v20  ;;  %v967_v21 = vpop.permute.xlu0 %966  ;;  %p1469_p12 = pnand %p1468_p11, %p1699_p5  ;;  %p1476_p2 = por %p1475_p1, %p1474_p0 }
 0x283   : > { %976 = vst.msk [vmem:[%s426_s1 + $0x10] sm:$0xff] %vm957_vm14, %v967_v21 }
 0x284   : > { %p1470_p13 = pneg %p1469_p12 }
 0x286   : > { %p1477_p3 = pnand %p1476_p2, %p1470_p13 }
 0x288   : > { %1480 = shalt.err (!%p1477_p3)
}
 0x289   : > { %s1481_s1 = scalar_lea.hbm %s1865_s12, 512  ;;  %s1485_s13 = scalar_lea.hbm %s2000_s7, 1024 }
 0x28a   : > { %p1482_p4 = scmp.ne.s32.totalorder %s1865_s12, %s1481_s1  ;;  %p1486_p9 = scmp.lt.u32.totalorder %s1865_s12, %s2000_s7 }
 0x28b   : > { %p1487_p10 = scmp.lt.u32.totalorder %s1485_s13, %s1481_s1  ;;  %p1489_p12 = scmp.lt.u32.totalorder %s1481_s1, %s1865_s12 }
 0x28c   : > { %p1483_p7 = pnand %p1482_p4, %p1699_p5 }
 0x28d   : > { %p1488_p11 = por %p1487_p10, %p1486_p9 }
 0x28e   : > { %p1484_p8 = pneg %p1483_p7 }
 0x28f   : > { %p1490_p13 = por %p1489_p12, %p1488_p11 }
 0x291   : > { %p1491_p0 = pnand %p1490_p13, %p1484_p8 }
 0x293   : > { %1494 = shalt.err (!%p1491_p0)
}
 0x294   : > { %s2007_s3 = smov 128   ;;  %s1596_s15 = smov 8   ;;  %v1265_v22 = vld [vmem:[%s1999_s6] ss:$0 sm:$0xff] }
 0x295   : > { %1381 = dma.vmem_to_hbm [thread:$0]  (%p1699_p5), %s1854_s30, 512, %s1865_s12, %s1869_s14, %s2007_s3, %s2007_s3, %s1596_s15  }
 0x296   : > { %s1003_s30 = sand.u32 1, %s1680_s21   ;;  %s390_s12 = scalar_lea.vmem [#allocation4], %s1811_s25 }
 0x297   : > { %s1048_s14 = sshll.u32 %s390_s12, 4  ;;  %s1070_s1 = sshll.u32 %s1829_s0, 4  ;;  %s1910_s14 = int_to_ptr.vmem [resolvable:$true] %s1048_s14  ;;  %s1912_s1 = int_to_ptr.vmem [resolvable:$true] %s1070_s1 }
 0x298   : > { %s1908_s21 = scalar_lea.hbm %s2001_s8, %s1857_s29  ;;  %s1919_s2 = scalar_lea.hbm %s2004_s11, %s1857_s29 }
 0x299   : > { %s1922_s24 = scalar_lea.sflag [#allocation5], %s1003_s30  ;;  %s1495_s22 = scalar_lea.vmem %s1910_s14, 512 }
 0x29a   : > { %p1496_p1 = scmp.ne.s32.totalorder %s1910_s14, %s1495_s22  ;;  %s1597_s13 = smov [#allocation4]  }
 0x29b   : > { %s1499_s16 = sshll.u32 %s1597_s13, 4  ;;  %s1500_s16 = int_to_ptr.vmem [resolvable:$false] %s1499_s16 }
 0x29c   : > { %p1497_p2 = pnand %p1496_p1, %p1699_p5  ;;  %s1501_s3 = scalar_lea.vmem %s1500_s16, 1024 }
 0x29d   : > { %p1502_p4 = scmp.lt.s32.totalorder %s1910_s14, %s1500_s16  ;;  %p1503_p7 = scmp.lt.s32.totalorder %s1501_s3, %s1495_s22 }
 0x29e   : > { %p1498_p3 = pneg %p1497_p2 }
 0x29f   : > { %p1504_p8 = por %p1503_p7, %p1502_p4 }
 0x2a1   : > { %p1505_p9 = pnand %p1504_p8, %p1498_p3 }
 0x2d8   : > { %v1353_v24 = vpop.f32.mrb[4].mxu0 }
 0x2d9   : > { %v892_v25 = vadd.f32 %v1353_v24, %v1265_v22  ;;  %v886_v26 = vpop.f32.mrb[5].mxu0 }
 0x2da   : > { %v887_v27 = vadd.f32 %v1265_v22, %v886_v26 }
 0x2db   : > { %v906_v28 = vmin.f32 %v892_v25, 20.0  ;;  %vm910_vm15 = vcmp.gt.f32.partialorder %v892_v25, 20.0 }
 0x2dc   : > { %v905_v29 = vmin.f32 %v887_v27, 20.0  ;;  %v1356_v30 = vpop.f32.mrb[6].mxu0  ;;  %vm909_vm0 = vcmp.gt.f32.partialorder %v887_v27, 20.0 }
 0x2dd   : > { %v915_v31 = vmul.f32 1.442695, %v906_v28  ;;  %v902_v32 = vadd.f32 %v1356_v30, %v1265_v22  ;;  %v896_v33 = vpop.f32.mrb[7].mxu0 }
 0x2de   : > { %v913_v34 = vmul.f32 1.442695, %v905_v29  ;;  %v897_v35 = vadd.f32 %v1265_v22, %v896_v33 }
 0x2df   : > { %1451 = vpow2.f32 %v915_v31  ;;  %v908_v23 = vmin.f32 %v902_v32, 20.0  ;;  %vm912_vm1 = vcmp.gt.f32.partialorder %v902_v32, 20.0 }
 0x2e0   : > { %1453 = vpow2.f32 %v913_v34  ;;  %v907_v36 = vmin.f32 %v897_v35, 20.0  ;;  %vm911_vm2 = vcmp.gt.f32.partialorder %v897_v35, 20.0 }
 0x2e1   : > { %v919_v37 = vmul.f32 1.442695, %v908_v23 }
 0x2e2   : > { %v917_v38 = vmul.f32 1.442695, %v907_v36 }
 0x2e3   : > { %1455 = vpow2.f32 %v919_v37 }
 0x2e4   : > { %1457 = vpow2.f32 %v917_v38 }
 0x2e9   : > { %v1452_v39 = vpop.eup %1451 }
 0x2ea   : > { %v1454_v40 = vpop.eup %1453  ;;  %v922_v41 = vadd.f32 1.0, %v1452_v39 }
 0x2eb   : > { %v921_v42 = vadd.f32 1.0, %v1454_v40 }
 0x2ec   : > { %1459 = vlog2.f32 %v922_v41 }
 0x2ed   : > { %v1456_v43 = vpop.eup %1455  ;;  %1461 = vlog2.f32 %v921_v42 }
 0x2ee   : > { %v1458_v45 = vpop.eup %1457  ;;  %v924_v46 = vadd.f32 1.0, %v1456_v43 }
 0x2ef   : > { %v923_v44 = vadd.f32 1.0, %v1458_v45 }
 0x2f0   : > { %1463 = vlog2.f32 %v924_v46 }
 0x2f1   : > { %1465 = vlog2.f32 %v923_v44 }
 0x2f6   : > { %v1460_v47 = vpop.eup %1459 }
 0x2f7   : > { %v1462_v48 = vpop.eup %1461  ;;  %v928_v49 = vmul.f32 0.6931472, %v1460_v47 }
 0x2f8   : > { %v926_v50 = vmul.f32 0.6931472, %v1462_v48 }
 0x2f9   : > { %v934_v51 = vsel %vm910_vm15, %v892_v25, %v928_v49 }
 0x2fa   : > { %v1464_v52 = vpop.eup %1463  ;;  %942 = vst.msk [vmem:[%s390_s12 + $0x8] sm:$0xff] %vm697_vm10, %v934_v51  ;;  %v933_v53 = vsel %vm909_vm0, %v887_v27, %v926_v50 }
 0x2fb   : > { %v1466_v54 = vpop.eup %1465  ;;  %941 = vst.msk [vmem:[%s390_s12] sm:$0xff] %vm697_vm10, %v933_v53  ;;  %v932_v55 = vmul.f32 0.6931472, %v1464_v52 }
 0x2fc   : > { %v930_v56 = vmul.f32 0.6931472, %v1466_v54 }
 0x2fd   : > { %v936_v57 = vsel %vm912_vm1, %v902_v32, %v932_v55 }
 0x2fe   : > { %944 = vst.msk [vmem:[%s390_s12 + $0x18] sm:$0xff] %vm697_vm10, %v936_v57  ;;  %v935_v58 = vsel %vm911_vm2, %v897_v35, %v930_v56 }
 0x2ff   : > { %943 = vst.msk [vmem:[%s390_s12 + $0x10] sm:$0xff] %vm697_vm10, %v935_v58 }
 0x300   : > { %1508 = shalt.err (!%p1505_p9)
}
 0x301   : > { %s1509_s29 = scalar_lea.hbm %s1908_s21, 512  ;;  %s1513_s25 = scalar_lea.hbm %s2001_s8, 1024 }
 0x302   : > { %p1510_p10 = scmp.ne.s32.totalorder %s1908_s21, %s1509_s29  ;;  %p1514_p13 = scmp.lt.u32.totalorder %s1908_s21, %s2001_s8 }
 0x303   : > { %p1515_p0 = scmp.lt.u32.totalorder %s1513_s25, %s1509_s29  ;;  %p1517_p2 = scmp.lt.u32.totalorder %s1509_s29, %s1908_s21 }
 0x304   : > { %p1511_p11 = pnand %p1510_p10, %p1699_p5 }
 0x305   : > { %p1516_p1 = por %p1515_p0, %p1514_p13 }
 0x306   : > { %p1512_p12 = pneg %p1511_p11 }
 0x307   : > { %p1518_p3 = por %p1517_p2, %p1516_p1 }
 0x309   : > { %p1519_p4 = pnand %p1518_p3, %p1512_p12 }
 0x30b   : > { %1522 = shalt.err (!%p1519_p4)
}
 0x30c   : > { %s2020_s3 = smov 128   ;;  %s1523_s22 = scalar_lea.vmem %s1912_s1, 512 }
 0x30d   : > { %1382 = dma.vmem_to_hbm [thread:$0]  (%p1699_p5), %s1910_s14, 512, %s1908_s21, %s1922_s24, %s2020_s3, %s2020_s3, %s1596_s15  }
 0x30e   : > { %p1524_p7 = scmp.ne.s32.totalorder %s1912_s1, %s1523_s22  ;;  %s1598_s16 = smov [#allocation6]  }
 0x30f   : > { %s1527_s29 = sshll.u32 %s1598_s16, 4  ;;  %s1528_s29 = int_to_ptr.vmem [resolvable:$false] %s1527_s29 }
 0x310   : > { %p1525_p8 = pnand %p1524_p7, %p1699_p5  ;;  %s1529_s30 = scalar_lea.vmem %s1528_s29, 1024 }
 0x311   : > { %p1530_p10 = scmp.lt.s32.totalorder %s1912_s1, %s1528_s29  ;;  %p1531_p11 = scmp.lt.s32.totalorder %s1529_s30, %s1523_s22 }
 0x312   : > { %p1526_p9 = pneg %p1525_p8 }
 0x313   : > { %p1532_p12 = por %p1531_p11, %p1530_p10 }
 0x315   : > { %p1533_p13 = pnand %p1532_p12, %p1526_p9 }
 0x317   : > { %1536 = shalt.err (!%p1533_p13)
}
 0x318   : > { %s1537_s14 = scalar_lea.hbm %s1919_s2, 512  ;;  %s1541_s25 = scalar_lea.hbm %s2004_s11, 1024 }
 0x319   : > { %p1538_p0 = scmp.ne.s32.totalorder %s1919_s2, %s1537_s14  ;;  %p1542_p3 = scmp.lt.u32.totalorder %s1919_s2, %s2004_s11 }
 0x31a   : > { %p1543_p4 = scmp.lt.u32.totalorder %s1541_s25, %s1537_s14  ;;  %p1545_p8 = scmp.lt.u32.totalorder %s1537_s14, %s1919_s2 }
 0x31b   : > { %p1539_p1 = pnand %p1538_p0, %p1699_p5 }
 0x31c   : > { %p1544_p7 = por %p1543_p4, %p1542_p3 }
 0x31d   : > { %p1540_p2 = pneg %p1539_p1 }
 0x31e   : > { %p1546_p9 = por %p1545_p8, %p1544_p7 }
 0x320   : > { %p1547_p10 = pnand %p1546_p9, %p1540_p2 }
 0x322   : > { %1550 = shalt.err (!%p1547_p10)
}
 0x323   : > { %1383 = dma.vmem_to_hbm [thread:$0]  (%p1699_p5), %s1912_s1, 512, %s1919_s2, %s1922_s24, %s2020_s3, %s2020_s3, %s1596_s15  }
 0x324 PF: > { %p1397_p11 = scmp.ge.s32.totalorder %s1589_s20, 2  ;;  %s1085_s22 = sand.u32 1, %s1577_s17  }
 0x325   : > { %s1086_s16 = scalar_lea.sflag [#allocation3], %s1085_s22 }
 0x326   : > { %p1388_p12 = pnand %p1397_p11, %p1703_p6 }
 0x328   : > { %1568 = dma.done.wait (!%p1388_p12), %s1086_s16, 512  }
 0x329   : > { %1570 = vsyncadd (!%p1388_p12), %s1086_s16, 4294966784  ;;  %s2021_s27 = sadd.s32 4294967294, %s1589_s20  }
 0x32a   : > { %s1094_s29 = sand.u32 1, %s2021_s27  }
 0x32b   : > { %s1095_s30 = scalar_lea.sflag [#allocation5], %s1094_s29 }
 0x32c   : > { %1572 = dma.done.wait (!%p1388_p12), %s1095_s30, 1024  }
 0x32d   : > { %1574 = vsyncadd (!%p1388_p12), %s1095_s30, 4294966272  ;;  %p25_p5 = scmp.ge.s32.totalorder %s1684_s23, 4   ;;  %s2022_s17 = smov %s1581_s18 }
 0x32e   : > { %s2023_s18 = smov %s1585_s19  ;;  %s2024_s19 = smov %s1697_s26 }
 0x32f   : > { %s2025_s20 = smov %s1684_s23  ;;  %27 = sbr.rel (!%p25_p5) target bundleno = 10 (0xa), region = 139 }
 0x336   :  { %1125 = vsyncpa [#allocation3], 1 }
 0x337   :  { %1127 = vsyncpa [#allocation3 + $0x1], 1 }
 0x338   :  { %1128 = vsyncpa [#allocation5], 1 }
 0x339   :  { %1130 = vsyncpa [#allocation5 + $0x1], 1 }

</bundles_post_ra>
